<compile_context>
chip_gen: v5e
topology: v5e:2x2
jax: 0.10.0
libtpu: 0.0.40
codegen_flags: <defaults>
</compile_context>

<pallas_src>
import numpy as np
import jax
import jax.numpy as jnp
from jax.experimental import pallas as pl
from jax.experimental.pallas import tpu as pltpu


RDIM = -2  # representation (m = -l..l) axis, as in SO3VecArray convention


def _get_tensor_ell(shape, rdim):
    return (shape[rdim] - 1) // 2


def _round_up(x, m):
    return ((x + m - 1) // m) * m


# ----------------------------------------------------------------------------
# Fused Pallas kernel: one block matmul per (irrep, M-tile) grid step
# ----------------------------------------------------------------------------
def so3_linear_fused_kernel(x_ref, w_ref, o_ref):
    # x_ref: (tm, Kp)   w_ref: (Kp, Np)   o_ref: (tm, Np)
    o_ref[...] = jnp.dot(
        x_ref[...], w_ref[...], preferred_element_type=jnp.float32
    ).astype(o_ref.dtype)


def _so3_linear_fused(x_stacked, w_stacked, *, tm, out_dtype):
    """x_stacked: (L, M_pad, Kp)  w_stacked: (L, Kp, Np)  ->  (L, M_pad, Np)."""
    L, m_pad, kp = x_stacked.shape
    _, _, np_ = w_stacked.shape
    grid_m = m_pad // tm

    flops = int(2 * L * m_pad * kp * np_)
    bytes_accessed = int(
        x_stacked.size * x_stacked.dtype.itemsize
        + w_stacked.size * w_stacked.dtype.itemsize
        + L * m_pad * np_ * jnp.dtype(out_dtype).itemsize
    )

    return pl.pallas_call(
        so3_linear_fused_kernel,
        out_shape=jax.ShapeDtypeStruct((L, m_pad, np_), out_dtype),
        grid=(L, grid_m),
        in_specs=[
            # per-irrep input tile; leading (irrep) dim squeezed out of the kernel view
            pl.BlockSpec((None, tm, kp), lambda li, mi: (li, mi, 0)),
            # per-irrep packed weight block; resident across the M tiles of this irrep
            pl.BlockSpec((None, kp, np_), lambda li, mi: (li, 0, 0)),
        ],
        out_specs=pl.BlockSpec((None, tm, np_), lambda li, mi: (li, mi, 0)),
        compiler_params=pltpu.CompilerParams(
            dimension_semantics=("parallel", "parallel")
        ),
        cost_estimate=pl.CostEstimate(
            flops=flops, transcendentals=0, bytes_accessed=bytes_accessed
        ),
    )(x_stacked, w_stacked)


# ----------------------------------------------------------------------------
# SO3Linear module (JAX / Pallas)
# ----------------------------------------------------------------------------
class SO3LinearPallas:
    def __init__(self, transformation_dict, key, compute_dtype=jnp.float32):
        # compute_dtype=jnp.bfloat16 gives the full v6e/v7x MXU rate (accumulation
        # stays f32 inside the kernel); default f32 preserves reference numerics.
        self.transformation_dict = {
            int(l): (int(ci), int(co)) for l, (ci, co) in transformation_dict.items()
        }
        self.compute_dtype = compute_dtype

        max_c_in = max(ci for ci, _ in self.transformation_dict.values())
        max_c_out = max(co for _, co in self.transformation_dict.values())
        self.k_pad = 2 * max_c_in                      # [xr | xi] contraction width
        self.n_pad = _round_up(2 * max_c_out, 128)     # lane-dense output stores

        self.weights_real = {}
        self.weights_imag = {}
        self.packed_weights = {}
        for l, (c_in, c_out) in sorted(self.transformation_dict.items()):
            key, kr, ki = jax.random.split(key, 3)
            # torch.nn.Linear default init: U(-1/sqrt(c_in), 1/sqrt(c_in)), shape (c_out, c_in)
            bound = 1.0 / np.sqrt(c_in)
            wr = jax.random.uniform(kr, (c_out, c_in), jnp.float32, -bound, bound)
            wi = jax.random.uniform(ki, (c_out, c_in), jnp.float32, -bound, bound)
            self.weights_real[l] = wr
            self.weights_imag[l] = wi
            # Pre-packed real block matmul weight (done once at init):
            #   [xr | xi] @ [[Wr^T,  Wi^T],
            #                [-Wi^T, Wr^T]]  = [out_r | out_i]
            top = jnp.concatenate([wr.T, wi.T], axis=1)    # (c_in, 2*c_out)
            bot = jnp.concatenate([-wi.T, wr.T], axis=1)   # (c_in, 2*c_out)
            blk = jnp.concatenate([top, bot], axis=0)      # (2*c_in, 2*c_out)
            blk = jnp.pad(
                blk,
                ((0, self.k_pad - 2 * c_in), (0, self.n_pad - 2 * c_out)),
            ).astype(compute_dtype)
            self.packed_weights[l] = blk

    def __call__(self, X_list, rdim=RDIM):
        ells = [_get_tensor_ell(x.shape, rdim) for x in X_list]

        metas = []
        m_max = 1
        for x, l in zip(X_list, ells):
            two, B, m_dim, c_in = x.shape
            assert two == 2 and m_dim == 2 * l + 1
            assert c_in == self.transformation_dict[l][0]
            M_l = B * m_dim
            metas.append((B, m_dim, c_in, M_l))
            m_max = max(m_max, M_l)

        # M tile: multiple of 8 sublanes, capped so the (tm, Kp)+(tm, Np) double
        # buffers stay far below the v7x 32 MiB scoped-VMEM default.
        tm = min(512, _round_up(m_max, 8))
        m_pad = _round_up(m_max, tm)

        # Pack inputs: one (m_pad, k_pad) slab per irrep with [xr | xi] columns.
        slabs = []
        w_slabs = []
        for x, l, (B, m_dim, c_in, M_l) in zip(X_list, ells, metas):
            xr = x[0].reshape(M_l, c_in)
            xi = x[1].reshape(M_l, c_in)
            slab = jnp.concatenate([xr, xi], axis=1)  # (M_l, 2*c_in)
            slab = jnp.pad(
                slab, ((0, m_pad - M_l), (0, self.k_pad - 2 * c_in))
            ).astype(self.compute_dtype)
            slabs.append(slab)
            w_slabs.append(self.packed_weights[l])

        x_stacked = jnp.stack(slabs, axis=0)    # (L, m_pad, k_pad)
        w_stacked = jnp.stack(w_slabs, axis=0)  # (L, k_pad, n_pad)

        out_stacked = _so3_linear_fused(
            x_stacked, w_stacked, tm=tm, out_dtype=jnp.float32
        )

        # Unpack per-irrep outputs: slice padding, split [out_r | out_i].
        outs = []
        for i, (l, (B, m_dim, c_in, M_l)) in enumerate(zip(ells, metas)):
            c_out = self.transformation_dict[l][1]
            blk = out_stacked[i, :M_l, : 2 * c_out]
            o_r = blk[:, :c_out].reshape(B, m_dim, c_out)
            o_i = blk[:, c_out:].reshape(B, m_dim, c_out)
            outs.append(jnp.stack([o_r, o_i], axis=0))

        idx = np.argsort(np.array(ells), kind="stable")
        return [outs[i] for i in idx]


# Pure-JAX reference for correctness checking.
def _so3_linear_ref(X_list, module, rdim=RDIM):
    outs = []
    ells = []
    for x in X_list:
        l = _get_tensor_ell(x.shape, rdim)
        wr = module.weights_real[l]
        wi = module.weights_imag[l]
        xr, xi = x[0], x[1]
        o_r = jnp.einsum("bmk,nk->bmn", xr, wr) - jnp.einsum("bmk,nk->bmn", xi, wi)
        o_i = jnp.einsum("bmk,nk->bmn", xi, wr) + jnp.einsum("bmk,nk->bmn", xr, wi)
        outs.append(jnp.stack([o_r, o_i], axis=0))
        ells.append(l)
    idx = np.argsort(np.array(ells), kind="stable")
    return [outs[i] for i in idx]


if __name__ == "__main__":
    key = jax.random.PRNGKey(0)

    # transformation_dict: l -> (c_in, c_out)
    transformation_dict = {0: (4, 8), 1: (4, 8), 2: (6, 16)}
    batch = 2

    key, kmod = jax.random.split(key)
    module = SO3LinearPallas(transformation_dict, kmod)

    # SO3VecArray-like input: list of (2, B, 2l+1, c_in) tensors,
    # deliberately given out of l-order to exercise the argsort.
    X = []
    for l in [2, 0, 1]:
        c_in, _ = transformation_dict[l]
        key, kx = jax.random.split(key)
        X.append(jax.random.normal(kx, (2, batch, 2 * l + 1, c_in), jnp.float32))

    Y = module(X)
    Y = [jax.block_until_ready(y) for y in Y]

    Y_ref = _so3_linear_ref(X, module)
    for y, yr in zip(Y, Y_ref):
        assert y.shape == yr.shape
        np.testing.assert_allclose(np.asarray(y), np.asarray(yr), rtol=1e-4, atol=1e-4)

    # TODO(synk): the original module returns an SO3VecArray wrapper; here we return the
    # plain sorted list of irrep tensors (same data, same order).
    print("KERNEL_OK")
</pallas_src>

<mosaic_0001>
module attributes {stable_mosaic.version = 11 : i64} {
  func.func @so3_linear_fused_kernel(%arg0: i32, %arg1: i32, %arg2: memref<1x16x12xf32, #tpu.memory_space<vmem>>, %arg3: memref<1x12x128xf32, #tpu.memory_space<vmem>>, %arg4: memref<1x16x128xf32, #tpu.memory_space<vmem>>) attributes {dimension_semantics = [#tpu.dimension_semantics<parallel>, #tpu.dimension_semantics<parallel>], iteration_bounds = array<i64: 3, 1>, scalar_prefetch = 0 : i64, scratch_operands = 0 : i64, tpu.core_type = #tpu.core_type<tc>, window_params = [{transform_indices = @transform_0, window_bounds = array<i64: 1, 16, 12>}, {transform_indices = @transform_1, window_bounds = array<i64: 1, 12, 128>}, {transform_indices = @transform_2, window_bounds = array<i64: 1, 16, 128>}]} {
    %c0 = arith.constant 0 : index
    %c0_0 = arith.constant 0 : index
    %c0_1 = arith.constant 0 : index
    %0 = vector.load %arg2[%c0, %c0_0, %c0_1] : memref<1x16x12xf32, #tpu.memory_space<vmem>>, vector<1x16x12xf32>
    %1 = vector.shape_cast %0 : vector<1x16x12xf32> to vector<16x12xf32>
    %c0_2 = arith.constant 0 : index
    %c0_3 = arith.constant 0 : index
    %c0_4 = arith.constant 0 : index
    %2 = vector.load %arg3[%c0_2, %c0_3, %c0_4] : memref<1x12x128xf32, #tpu.memory_space<vmem>>, vector<1x12x128xf32>
    %3 = vector.shape_cast %2 : vector<1x12x128xf32> to vector<12x128xf32>
    %cst = arith.constant dense<0.000000e+00> : vector<16x128xf32>
    %4 = tpu.matmul %1, %3, %cst {dimension_numbers = #tpu.dot_dimension_numbers<[1], [0], [0], [1], [0, 0, 1, 1], [], []>} : vector<16x12xf32>, vector<12x128xf32>, vector<16x128xf32> -> vector<16x128xf32>
    %c0_5 = arith.constant 0 : index
    %c0_6 = arith.constant 0 : index
    %c0_7 = arith.constant 0 : index
    %5 = vector.load %arg4[%c0_5, %c0_6, %c0_7] : memref<1x16x128xf32, #tpu.memory_space<vmem>>, vector<1x16x128xf32>
    %6 = vector.shape_cast %5 : vector<1x16x128xf32> to vector<16x128xf32>
    %7 = vector.shape_cast %4 : vector<16x128xf32> to vector<1x16x128xf32>
    tpu.vector_store %arg4[%c0_5, %c0_6, %c0_7], %7 {strides = array<i32>} : memref<1x16x128xf32, #tpu.memory_space<vmem>>, vector<1x16x128xf32>,
    return
  }
  func.func @transform_0(%arg0: i32, %arg1: i32) -> (i32, i32, i32) {
    %c0_i32 = arith.constant 0 : i32
    %c0_i32_0 = arith.constant 0 : i32
    return %arg0, %arg1, %c0_i32 : i32, i32, i32
  }
  func.func @transform_1(%arg0: i32, %arg1: i32) -> (i32, i32, i32) {
    %c0_i32 = arith.constant 0 : i32
    %c0_i32_0 = arith.constant 0 : i32
    %c0_i32_1 = arith.constant 0 : i32
    return %arg0, %c0_i32, %c0_i32_0 : i32, i32, i32
  }
  func.func @transform_2(%arg0: i32, %arg1: i32) -> (i32, i32, i32) {
    %c0_i32 = arith.constant 0 : i32
    %c0_i32_0 = arith.constant 0 : i32
    return %arg0, %arg1, %c0_i32 : i32, i32, i32
  }
}

</mosaic_0001>

<bundles_post_ra>
// kernel: tpu_custom_call.1
= control target key start
LH: loop header
LB: loop body
LE: loop exit
PB: predicated region body
PF: predicated region fallthrough
CT: control target
= control target key end

     0   :  { %7 = vsyncpa [#allocation3], 0  ;;  %s798_s0 = inlined_call_operand.hbm [shape: f32[3,16,12], index: 0, kind: input, shape index: {}]   ;;  %s799_s1 = inlined_call_operand.hbm [shape: f32[3,12,128], index: 1, kind: input, shape index: {}]   ;;  %s800_s2 = inlined_call_operand.hbm [shape: f32[3,16,128], index: 2, kind: output, shape index: {}]  }
   0x1   :  { %9 = vsyncpa [#allocation3 + $0x1], 0 }
   0x2   :  { %10 = vsyncpa [#allocation6], 0 }
   0x3   :  { %12 = vsyncpa [#allocation6 + $0x1], 0 }
   0x4   :  { %13 = vsyncpa [#allocation4], 0 }
   0x5   :  { %15 = vsyncpa [#allocation4 + $0x1], 0  ;;  %s659_s9 = smov 0   ;;  %s661_s10 = smov 0  }
   0x6   :  { %s663_s11 = smov 0   ;;  %s665_s12 = smov 0  }
   0x7   :  { %s667_s13 = smov 0   ;;  %s669_s14 = smov 0  }
   0x8 LB: > { %s394_s15 = sadd.s32 4294967295, %s638_s14   ;;  %s395_s16 = sadd.s32 4294967294, %s638_s14   ;;  %s638_s14 = sphi %s669_s14, %s21_s14   ;;  %s634_s13 = sphi %s667_s13, %s810_s13   ;;  %s630_s12 = sphi %s665_s12, %s809_s12   ;;  %s626_s11 = sphi %s663_s11, %s808_s11   ;;  %s622_s10 = sphi %s661_s10, %s807_s10   ;;  %s618_s9 = sphi %s659_s9, %s806_s9  }
   0x9   : > { %s33_s17 = sadd.s32 1, %s634_s13  ;;  %s42_s18 = sadd.s32 1, %s626_s11 }
   0xa   : > { %p35_p0 = scmp.ge.s32.totalorder %s33_s17, 3  ;;  %p49_p1 = scmp.ne.s32.totalorder %s626_s11, %s622_s10 }
   0xb   : > { %p50_p2 = scmp.eq.s32.totalorder %s638_s14, 0  ;;  %p55_p3 = scmp.ne.s32.totalorder %s622_s10, %s618_s9 }
   0xc   : > { %s812_s17 = smov (%p35_p0, %s33_s17), 0  ;;  %p56_p5 = scmp.eq.s32.totalorder %s394_s15, 0 }
   0xd   : > { %p700_p4 = por %p50_p2, %p49_p1  ;;  %s37_s20 = ssub.s32 %s634_s13, %s812_s17 }
   0xe   : > { %p107_p6 = scmp.eq.s32.totalorder %s394_s15, 2  ;;  %p40_p7 = scmp.eq.s32.totalorder %s37_s20, 0 }
   0xf   : > { %p706_p8 = por %p56_p5, %p55_p3  ;;  %p113_p10 = scmp.eq.s32.totalorder %s395_s16, 2 }
  0x10   : > { %p710_p9 = por %p107_p6, %p49_p1  ;;  %p438_p12 = scmp.lt.s32.totalorder %s638_s14, 3 }
  0x11   : > { %s715_s23 = scalar_select %p40_p7, %s626_s11, %s42_s18  }
  0x12   : > { %p717_p11 = por %p113_p10, %p55_p3  ;;  %s723_s25 = sand.u32 1, %s626_s11  }
  0x13   : > { %s398_s26 = sshll.u32 %s723_s25, 4  ;;  %s416_s27 = sshll.u32 %s634_s13, 4 }
  0x14   : > { %s144_s30 = scalar_lea.hbm %s798_s0, %s416_s27  ;;  %s137_s3 = scalar_lea.vmem [#allocation2], %s398_s26 }
  0x15   : > { %s147_s4 = sshll.u32 %s137_s3, 4  ;;  %s145_s5 = sshll.u32 %s144_s30, 4  ;;  %s148_s4 = int_to_ptr.vmem [resolvable:$true] %s147_s4  ;;  %s146_s5 = int_to_ptr.hbm [resolvable:$true] %s145_s5 }
  0x16   : > { %p732_p13 = pnand %p438_p12, %p700_p4  ;;  %p404_p0 = scmp.ge.s32.totalorder %s638_s14, 1 }
  0x17   : > { %s134_s7 = scalar_lea.sflag [#allocation3], %s723_s25  ;;  %s640_s8 = smov 128  }
  0x18   : > { %s641_s15 = smov 8   ;;  %p177_p1 = scmp.lt.s32.totalorder %s638_s14, 4 }
  0x19   : > { %430 = dma.hbm_to_vmem [thread:$0]  (!%p732_p13), %s146_s5, 256, %s148_s4, %s134_s7, %s640_s8, %s640_s8, %s641_s15  }
  0x1a   : > { %s166_s20 = scalar_lea.hbm %s799_s1, %s416_s27  ;;  %p178_p2 = pnand %p404_p0, %p177_p1 }
  0x1b   : > { %s167_s28 = sshll.u32 %s166_s20, 4  ;;  %s161_s19 = scalar_lea.vmem [#allocation5], %s398_s26  ;;  %s168_s28 = int_to_ptr.hbm [resolvable:$true] %s167_s28 }
  0x1c   : > { %s169_s29 = sshll.u32 %s161_s19, 4  ;;  %s158_s30 = scalar_lea.sflag [#allocation6], %s723_s25  ;;  %s170_s29 = int_to_ptr.vmem [resolvable:$true] %s169_s29 }
  0x1d   : > { %433 = dma.hbm_to_vmem [thread:$0]  (!%p732_p13), %s168_s28, 256, %s170_s29, %s158_s30, %s640_s8, %s640_s8, %s641_s15  }
  0x1e   : > { %181 = sbr.rel (%p178_p2) target bundleno = 173 (0xad), region = 28  ;;  %s748_s3 = sand.u32 (!%p178_p2), 1, %s622_s10  }
  0x1f   : > { %s405_s4 = sshll.u32 (!%p178_p2), %s748_s3, 4  ;;  %s184_s5 = scalar_lea.sflag (!%p178_p2), [#allocation3], %s748_s3 }
  0x20   : > { %s187_s7 = scalar_lea.vmem (!%p178_p2), [#allocation2], %s405_s4 }
  0x23   : > { %605 = dma.done.wait (%p706_p8), %s184_s5, 256  }
  0x24   : > { %607 = vsyncadd (%p706_p8), %s184_s5, 4294967040  ;;  %s194_s25 = scalar_lea.sflag [#allocation6], %s748_s3  ;;  %s197_s26 = scalar_lea.vmem [#allocation5], %s405_s4 }
  0x25   : > { %609 = dma.done.wait (%p706_p8), %s194_s25, 256  }
  0x26   : > { %611 = vsyncadd (%p706_p8), %s194_s25, 4294967040  ;;  %vm237_vm0 = vcmask 1043456   ;;  %v229_v0 = vld [vmem:[%s197_s26 + $0x8] sm:$0xf]  ;;  %v228_v1 = vld [vmem:[%s197_s26] sm:$0xff]  ;;  %vm230_vm1 = vcmask 97280  }
  0x27   : > { %408 = vmatpush.msk.msra.mxu0 %vm237_vm0, %v229_v0  ;;  %419 = vmatpush.msk.msra.mxu1 %vm237_vm0, %v229_v0  ;;  %v226_v2 = vld [vmem:[%s187_s7] sm:$0xff]  ;;  %v227_v3 = vld [vmem:[%s187_s7 + $0x8] sm:$0xff]  ;;  %s418_s27 = sshll.u32 %s630_s12, 4  ;;  %s223_s15 = scalar_lea.vmem [#allocation7], %s405_s4 }
  0x28   : > { %s280_s21 = scalar_lea.hbm %s800_s2, %s418_s27  ;;  %s281_s16 = sshll.u32 %s223_s15, 4  ;;  %s282_s16 = int_to_ptr.vmem [resolvable:$true] %s281_s16 }
  0x29   : > { %256 = vmatpush.msra.mxu0 %v228_v1  ;;  %420 = vmatpush.msra.mxu1 %v228_v1  ;;  %s283_s18 = sshll.u32 %s280_s21, 4  ;;  %s267_s20 = scalar_lea.sflag [#allocation4], %s748_s3  ;;  %s284_s18 = int_to_ptr.hbm [resolvable:$true] %s283_s18 }
  0x2a   : > { %409 = vmatmul.msk.f32.vlgmr.msra.gmra.mxu0 %vm230_vm1, %v226_v2  ;;  %410 = vmatmul.msk.f32.vlgmr.msra.gmra.mxu1 %vm230_vm1, %v227_v3  ;;  %s566_s28 = sshra.s32 %s284_s18, 4  ;;  %s572_s30 = scalar_lea.hbm %s800_s2, 48  ;;  %s567_s28 = int_to_ptr.hbm [resolvable:$true] %s566_s28 }
  0x2b   : > { %s568_s19 = scalar_lea.hbm %s567_s28, 16  ;;  %p573_p6 = scmp.lt.s32.totalorder %s567_s28, %s800_s2 }
  0x2c   : > { %p569_p3 = scmp.ne.s32.totalorder %s567_s28, %s568_s19  ;;  %p574_p7 = scmp.lt.s32.totalorder %s572_s30, %s568_s19 }
  0x2e   : > { %p570_p4 = pnand %p569_p3, %p710_p9  ;;  %p575_p8 = por %p574_p7, %p573_p6 }
  0x30   : > { %p571_p5 = pneg %p570_p4 }
  0x32   : > { %p576_p10 = pnand %p575_p8, %p571_p5 }
  0xa7   : > { %v258_v4 = vpop.f32.mrf.mxu0  ;;  %v261_v5 = vpop.f32.mrf.mxu1 }
  0xa8   : > { %264 = vst [vmem:[%s223_s15] sm:$0xff] %v258_v4 }
  0xa9   : > { %265 = vst [vmem:[%s223_s15 + $0x8] sm:$0xff] %v261_v5 }
  0xaa   : > { %579 = shalt.err (!%p576_p10)
}
  0xab   : > { %s642_s3 = smov 128   ;;  %s643_s7 = smov 8  }
  0xac   : > { %425 = dma.vmem_to_hbm [thread:$0]  (%p710_p9), %s282_s16, 256, %s284_s18, %s267_s20, %s642_s3, %s642_s3, %s643_s7  }
  0xad PF: > { %p439_p12 = scmp.ge.s32.totalorder %s638_s14, 2  ;;  %s298_s25 = sand.u32 1, %s618_s9  }
  0xae   : > { %s299_s26 = scalar_lea.sflag [#allocation4], %s298_s25 }
  0xaf   : > { %p435_p13 = pnand %p439_p12, %p717_p11 }
  0xb1   : > { %p436_p0 = pneg %p435_p13 }
  0xb3   : > { %613 = dma.done.wait (%p436_p0), %s299_s26, 256  }
  0xb4   : > { %615 = vsyncadd (%p436_p0), %s299_s26, 4294967040  ;;  %s21_s14 = sadd.s32 1, %s638_s14   ;;  %s806_s9 = smov %s622_s10 }
  0xb5   : > { %p18_p1 = scmp.ge.s32.totalorder %s21_s14, 5   ;;  %s807_s10 = smov %s626_s11 }
  0xb6   : > { %s808_s11 = smov %s715_s23  ;;  %s809_s12 = smov %s634_s13 }
  0xb7   : > { %s810_s13 = smov %s812_s17  ;;  %20 = sbr.rel (!%p18_p1) target bundleno = 8 (0x8), region = 86 }
  0xbc   :  { %305 = vsyncpa [#allocation3], 1 }
  0xbd   :  { %307 = vsyncpa [#allocation3 + $0x1], 1 }
  0xbe   :  { %308 = vsyncpa [#allocation6], 1 }
  0xbf   :  { %310 = vsyncpa [#allocation6 + $0x1], 1 }
  0xc0   :  { %311 = vsyncpa [#allocation4], 1 }
  0xc1   :  { %313 = vsyncpa [#allocation4 + $0x1], 1 }

</bundles_post_ra>
